<compile_context>
chip_gen: v7x
topology: tpu7x:2x2x1
jax: 0.10.0
libtpu: 0.0.40
codegen_flags: <defaults>
</compile_context>

<pallas_src>
import functools

import jax
import jax.numpy as jnp
from jax.experimental import pallas as pl
from jax.experimental.pallas import tpu as pltpu


def _round_up(v, m):
    return ((v + m - 1) // m) * m


def _pick_tile_hw(hw, requested=None):
    """Pick a spatial tile (rows of the im2col matrix per grid step)."""
    if requested is not None:
        if hw % requested != 0 or not (requested % 8 == 0 or requested == hw):
            raise ValueError(f"tile {requested} must divide HW={hw} and be a multiple of 8")
        return requested
    for cand in (512, 256, 128, 64, 32, 16, 8):
        if hw % cand == 0:
            return cand
    return hw


def im2col_3x3_same(x_nhwc):
    """(N, H, W, C) -> (N, H*W, 9*C) patches; tap order (dy, dx, cin)."""
    N, H, W, C = x_nhwc.shape
    xp = jnp.pad(x_nhwc, ((0, 0), (1, 1), (1, 1), (0, 0)))
    taps = [xp[:, dy:dy + H, dx:dx + W, :] for dy in range(3) for dx in range(3)]
    return jnp.concatenate(taps, axis=-1).reshape(N, H * W, 9 * C)


# ----------------------------------------------------------------------------
# Fused kernel: conv3x3 (as matmul) + bias + ReLU + GAP + Linear head
#   grid = (N, HW // tm);  axis 0 "parallel", axis 1 "arbitrary" (reduction)
# ----------------------------------------------------------------------------
def _fused_kernel(p_ref, wc_ref, bc_ref, wl_ref, bl_ref, out_ref, acc_ref):
    s = pl.program_id(1)

    @pl.when(s == 0)
    def _init():
        acc_ref[...] = jnp.zeros_like(acc_ref)

    # conv tile: (tm, K) bf16 @ (K, Cp) bf16 on the MXU, f32 accumulation.
    conv = jnp.dot(p_ref[...], wc_ref[...], preferred_element_type=jnp.float32)
    conv = jnp.maximum(conv + bc_ref[...], 0.0)                 # bias + ReLU (f32)

    # Partial global-average-pool: row-sum expressed as an MXU dot with a ones row,
    # accumulated in VMEM scratch (shape (1, Cp)).
    tile_rows = conv.shape[0]
    ones = jnp.ones((1, tile_rows), jnp.float32)
    acc_ref[...] += jnp.dot(ones, conv, preferred_element_type=jnp.float32)

    @pl.when(s == pl.num_programs(1) - 1)
    def _finalize():
        # 1/(H*W) is pre-folded into wl, so acc (a sum) directly feeds the Linear.
        out_ref[...] = (
            jnp.dot(acc_ref[...], wl_ref[...], preferred_element_type=jnp.float32)
            + bl_ref[...]
        )


def grad_cam_mod_forward(x_nchw, conv_w, conv_b, lin_w, lin_b, *, tm=None):
    """GradCamMod forward.

    x_nchw : (N, Cin, H, W) float32
    conv_w : (Cfeat, Cin, 3, 3)   -- PyTorch Conv2d layout
    conv_b : (Cfeat,)
    lin_w  : (num_classes, Cfeat) -- PyTorch Linear layout
    lin_b  : (num_classes,)
    Returns logits (N, num_classes) float32.
    """
    N, Cin, H, W = x_nchw.shape
    Cfeat = conv_w.shape[0]
    num_classes = lin_w.shape[0]
    HW = H * W
    K = 9 * Cin

    Cp = max(128, _round_up(Cfeat, 128))          # lane-dense feature channels
    Ncls_p = max(128, _round_up(num_classes, 128))  # lane-dense logits
    tm = _pick_tile_hw(HW, tm)
    n_s = HW // tm

    # ---- wrapper-side layout prep (plain JAX glue) ----
    x_nhwc = jnp.transpose(x_nchw, (0, 2, 3, 1)).astype(jnp.bfloat16)
    # TODO(synk): replace wrapper-side im2col with an implicit GEMM inside the kernel
    # (halo'd row slabs via manual DMA) to cut input-side HBM traffic ~9x at scale.
    patches = im2col_3x3_same(x_nhwc)                         # (N, HW, K) bf16

    # torch (Cout, Cin, KH, KW) -> im2col (KH*KW*Cin, Cout), tap order (dy, dx, cin).
    wc = jnp.transpose(conv_w, (2, 3, 1, 0)).reshape(K, Cfeat)
    wc = jnp.pad(wc, ((0, 0), (0, Cp - Cfeat))).astype(jnp.bfloat16)
    bc = jnp.pad(conv_b.reshape(1, Cfeat),
                 ((0, 0), (0, Cp - Cfeat))).astype(jnp.float32)

    # torch (out, in) -> (in, out); fold the 1/(H*W) GAP scale into the weight.
    wl = jnp.transpose(lin_w, (1, 0)) / float(HW)
    wl = jnp.pad(wl, ((0, Cp - Cfeat), (0, Ncls_p - num_classes))).astype(jnp.float32)
    bl = jnp.pad(lin_b.reshape(1, num_classes),
                 ((0, 0), (0, Ncls_p - num_classes))).astype(jnp.float32)

    cost = pl.CostEstimate(
        flops=2 * N * HW * K * Cp + 2 * N * HW * Cp + 2 * N * Cp * Ncls_p,
        transcendentals=0,
        bytes_accessed=(patches.size * 2 + wc.size * 2 + bc.size * 4
                        + wl.size * 4 + bl.size * 4 + N * Ncls_p * 4),
    )

    out = pl.pallas_call(
        _fused_kernel,
        grid=(N, n_s),
        in_specs=[
            pl.BlockSpec((None, tm, K), lambda n, s: (n, s, 0)),   # patches tile
            pl.BlockSpec((K, Cp), lambda n, s: (0, 0)),            # conv weight (resident)
            pl.BlockSpec((1, Cp), lambda n, s: (0, 0)),            # conv bias
            pl.BlockSpec((Cp, Ncls_p), lambda n, s: (0, 0)),       # linear weight (scaled)
            pl.BlockSpec((1, Ncls_p), lambda n, s: (0, 0)),        # linear bias
        ],
        out_specs=pl.BlockSpec((None, 1, Ncls_p), lambda n, s: (n, 0, 0)),
        out_shape=jax.ShapeDtypeStruct((N, 1, Ncls_p), jnp.float32),
        scratch_shapes=[pltpu.VMEM((1, Cp), jnp.float32)],         # GAP accumulator
        compiler_params=pltpu.CompilerParams(
            dimension_semantics=("parallel", "arbitrary"),
            vmem_limit_bytes=48 * 1024 * 1024,   # fits v7x's 64 MiB with headroom
        ),
        cost_estimate=cost,
    )(patches, wc, bc, wl, bl)

    return out.reshape(N, Ncls_p)[:, :num_classes]


if __name__ == "__main__":
    # Small shapes consistent with the forward pass.
    N, Cin, H, W = 2, 4, 16, 16
    Cfeat, num_classes = 32, 8

    key = jax.random.PRNGKey(0)
    k_x, k_cw, k_cb, k_lw, k_lb = jax.random.split(key, 5)

    x = jax.random.normal(k_x, (N, Cin, H, W), dtype=jnp.float32)

    # Deterministic synthetic parameters in native PyTorch layouts.
    conv_w = jax.random.normal(k_cw, (Cfeat, Cin, 3, 3), dtype=jnp.float32) * 0.1
    conv_b = jax.random.normal(k_cb, (Cfeat,), dtype=jnp.float32) * 0.1
    lin_w = jax.random.normal(k_lw, (num_classes, Cfeat), dtype=jnp.float32) * 0.1
    lin_b = jax.random.normal(k_lb, (num_classes,), dtype=jnp.float32) * 0.1

    fwd = jax.jit(functools.partial(grad_cam_mod_forward, tm=128))  # 2 spatial tiles per image
    out = jax.block_until_ready(fwd(x, conv_w, conv_b, lin_w, lin_b))

    # Pure-JAX f32 reference of the same module math.
    x_nhwc = jnp.transpose(x, (0, 2, 3, 1))
    patches_f32 = im2col_3x3_same(x_nhwc)                              # (N, HW, 9*Cin)
    w_mat = jnp.transpose(conv_w, (2, 3, 1, 0)).reshape(9 * Cin, Cfeat)
    feat = jnp.maximum(patches_f32 @ w_mat + conv_b[None, None, :], 0.0)
    pooled = jnp.mean(feat, axis=1)                                    # GAP(1,1) + flatten
    ref = pooled @ lin_w.T + lin_b[None, :]

    assert out.shape == (N, num_classes)
    # Tolerance relaxed vs the pure-f32 path because conv inputs/weights run on the bf16 MXU.
    assert jnp.allclose(out, ref, atol=1e-2, rtol=1e-2), (
        f"max abs err {jnp.max(jnp.abs(out - ref))}")

    print("KERNEL_OK")
</pallas_src>

<mosaic_0001>
module attributes {stable_mosaic.version = 11 : i64} {
  func.func @_fused_kernel(%arg0: i32, %arg1: i32, %arg2: memref<1x128x36xbf16, #tpu.memory_space<vmem>>, %arg3: memref<36x128xbf16, #tpu.memory_space<vmem>>, %arg4: memref<1x128xf32, #tpu.memory_space<vmem>>, %arg5: memref<128x128xf32, #tpu.memory_space<vmem>>, %arg6: memref<1x128xf32, #tpu.memory_space<vmem>>, %arg7: memref<1x1x128xf32, #tpu.memory_space<vmem>>, %arg8: memref<1x128xf32, #tpu.memory_space<vmem>>) attributes {dimension_semantics = [#tpu.dimension_semantics<parallel>, #tpu.dimension_semantics<arbitrary>], iteration_bounds = array<i64: 2, 2>, scalar_prefetch = 0 : i64, scratch_operands = 1 : i64, tpu.core_type = #tpu.core_type<tc>, window_params = [{transform_indices = @transform_0, window_bounds = array<i64: 1, 128, 36>}, {pipeline_mode = #tpu.pipeline_mode<synchronous>, transform_indices = @transform_1, window_bounds = array<i64: 36, 128>}, {pipeline_mode = #tpu.pipeline_mode<synchronous>, transform_indices = @transform_2, window_bounds = array<i64: 1, 128>}, {pipeline_mode = #tpu.pipeline_mode<synchronous>, transform_indices = @transform_3, window_bounds = array<i64: 128, 128>}, {pipeline_mode = #tpu.pipeline_mode<synchronous>, transform_indices = @transform_4, window_bounds = array<i64: 1, 128>}, {transform_indices = @transform_5, window_bounds = array<i64: 1, 1, 128>}]} {
    %c0_i32 = arith.constant 0 : i32
    %0 = arith.cmpi eq, %arg1, %c0_i32 : i32
    %1 = arith.extui %0 : i1 to i32
    %c0_i32_0 = arith.constant 0 : i32
    %2 = arith.cmpi ne, %1, %c0_i32_0 : i32
    scf.if %2 {
      %cst_15 = arith.constant 0.000000e+00 : f32
      %20 = vector.broadcast %cst_15 : f32 to vector<1x128xf32>
      %c0_16 = arith.constant 0 : index
      %c0_17 = arith.constant 0 : index
      %21 = vector.load %arg8[%c0_16, %c0_17] : memref<1x128xf32, #tpu.memory_space<vmem>>, vector<1x128xf32>
      tpu.vector_store %arg8[%c0_16, %c0_17], %20 {strides = array<i32>} : memref<1x128xf32, #tpu.memory_space<vmem>>, vector<1x128xf32>,
    } else {
    }
    %c0 = arith.constant 0 : index
    %c0_1 = arith.constant 0 : index
    %c0_2 = arith.constant 0 : index
    %3 = vector.load %arg2[%c0, %c0_1, %c0_2] : memref<1x128x36xbf16, #tpu.memory_space<vmem>>, vector<1x128x36xbf16>
    %4 = vector.shape_cast %3 : vector<1x128x36xbf16> to vector<128x36xbf16>
    %c0_3 = arith.constant 0 : index
    %c0_4 = arith.constant 0 : index
    %5 = vector.load %arg3[%c0_3, %c0_4] : memref<36x128xbf16, #tpu.memory_space<vmem>>, vector<36x128xbf16>
    %cst = arith.constant dense<0.000000e+00> : vector<128x128xf32>
    %6 = tpu.matmul %4, %5, %cst {dimension_numbers = #tpu.dot_dimension_numbers<[1], [0], [0], [1], [0, 0, 1, 1], [], []>} : vector<128x36xbf16>, vector<36x128xbf16>, vector<128x128xf32> -> vector<128x128xf32>
    %c0_5 = arith.constant 0 : index
    %c0_6 = arith.constant 0 : index
    %7 = vector.load %arg4[%c0_5, %c0_6] : memref<1x128xf32, #tpu.memory_space<vmem>>, vector<1x128xf32>
    %8 = vector.broadcast %7 : vector<1x128xf32> to vector<128x128xf32>
    %9 = arith.addf %6, %8 : vector<128x128xf32>
    %cst_7 = arith.constant 0.000000e+00 : f32
    %10 = vector.broadcast %cst_7 : f32 to vector<128x128xf32>
    %11 = arith.maximumf %9, %10 : vector<128x128xf32>
    %cst_8 = arith.constant 1.000000e+00 : f32
    %12 = vector.broadcast %cst_8 : f32 to vector<1x128xf32>
    %c0_9 = arith.constant 0 : index
    %c0_10 = arith.constant 0 : index
    %13 = vector.load %arg8[%c0_9, %c0_10] : memref<1x128xf32, #tpu.memory_space<vmem>>, vector<1x128xf32>
    %cst_11 = arith.constant dense<0.000000e+00> : vector<1x128xf32>
    %14 = tpu.matmul %12, %11, %cst_11 {dimension_numbers = #tpu.dot_dimension_numbers<[1], [0], [0], [1], [0, 0, 1, 1], [], []>} : vector<1x128xf32>, vector<128x128xf32>, vector<1x128xf32> -> vector<1x128xf32>
    %15 = arith.addf %13, %14 : vector<1x128xf32>
    %c0_12 = arith.constant 0 : index
    %c0_13 = arith.constant 0 : index
    %16 = vector.load %arg8[%c0_12, %c0_13] : memref<1x128xf32, #tpu.memory_space<vmem>>, vector<1x128xf32>
    tpu.vector_store %arg8[%c0_12, %c0_13], %15 {strides = array<i32>} : memref<1x128xf32, #tpu.memory_space<vmem>>, vector<1x128xf32>,
    %c1_i32 = arith.constant 1 : i32
    %17 = arith.cmpi eq, %arg1, %c1_i32 : i32
    %18 = arith.extui %17 : i1 to i32
    %c0_i32_14 = arith.constant 0 : i32
    %19 = arith.cmpi ne, %18, %c0_i32_14 : i32
    scf.if %19 {
      %c0_15 = arith.constant 0 : index
      %c0_16 = arith.constant 0 : index
      %20 = vector.load %arg8[%c0_15, %c0_16] : memref<1x128xf32, #tpu.memory_space<vmem>>, vector<1x128xf32>
      %c0_17 = arith.constant 0 : index
      %c0_18 = arith.constant 0 : index
      %21 = vector.load %arg5[%c0_17, %c0_18] : memref<128x128xf32, #tpu.memory_space<vmem>>, vector<128x128xf32>
      %cst_19 = arith.constant dense<0.000000e+00> : vector<1x128xf32>
      %22 = tpu.matmul %20, %21, %cst_19 {dimension_numbers = #tpu.dot_dimension_numbers<[1], [0], [0], [1], [0, 0, 1, 1], [], []>} : vector<1x128xf32>, vector<128x128xf32>, vector<1x128xf32> -> vector<1x128xf32>
      %c0_20 = arith.constant 0 : index
      %c0_21 = arith.constant 0 : index
      %23 = vector.load %arg6[%c0_20, %c0_21] : memref<1x128xf32, #tpu.memory_space<vmem>>, vector<1x128xf32>
      %24 = arith.addf %22, %23 : vector<1x128xf32>
      %c0_22 = arith.constant 0 : index
      %c0_23 = arith.constant 0 : index
      %c0_24 = arith.constant 0 : index
      %25 = vector.load %arg7[%c0_22, %c0_23, %c0_24] : memref<1x1x128xf32, #tpu.memory_space<vmem>>, vector<1x1x128xf32>
      %26 = vector.shape_cast %25 : vector<1x1x128xf32> to vector<1x128xf32>
      %27 = vector.shape_cast %24 : vector<1x128xf32> to vector<1x1x128xf32>
      tpu.vector_store %arg7[%c0_22, %c0_23, %c0_24], %27 {strides = array<i32>} : memref<1x1x128xf32, #tpu.memory_space<vmem>>, vector<1x1x128xf32>,
    } else {
    }
    return
  }
  func.func @transform_0(%arg0: i32, %arg1: i32) -> (i32, i32, i32) {
    %c0_i32 = arith.constant 0 : i32
    %c0_i32_0 = arith.constant 0 : i32
    return %arg0, %arg1, %c0_i32 : i32, i32, i32
  }
  func.func @transform_1(%arg0: i32, %arg1: i32) -> (i32, i32) {
    %c0_i32 = arith.constant 0 : i32
    %c0_i32_0 = arith.constant 0 : i32
    %c0_i32_1 = arith.constant 0 : i32
    return %c0_i32, %c0_i32_0 : i32, i32
  }
  func.func @transform_2(%arg0: i32, %arg1: i32) -> (i32, i32) {
    %c0_i32 = arith.constant 0 : i32
    %c0_i32_0 = arith.constant 0 : i32
    %c0_i32_1 = arith.constant 0 : i32
    return %c0_i32, %c0_i32_0 : i32, i32
  }
  func.func @transform_3(%arg0: i32, %arg1: i32) -> (i32, i32) {
    %c0_i32 = arith.constant 0 : i32
    %c0_i32_0 = arith.constant 0 : i32
    %c0_i32_1 = arith.constant 0 : i32
    return %c0_i32, %c0_i32_0 : i32, i32
  }
  func.func @transform_4(%arg0: i32, %arg1: i32) -> (i32, i32) {
    %c0_i32 = arith.constant 0 : i32
    %c0_i32_0 = arith.constant 0 : i32
    %c0_i32_1 = arith.constant 0 : i32
    return %c0_i32, %c0_i32_0 : i32, i32
  }
  func.func @transform_5(%arg0: i32, %arg1: i32) -> (i32, i32, i32) {
    %c0_i32 = arith.constant 0 : i32
    %c0_i32_0 = arith.constant 0 : i32
    %c0_i32_1 = arith.constant 0 : i32
    return %arg0, %c0_i32, %c0_i32_0 : i32, i32, i32
  }
}

</mosaic_0001>

<bundles_post_ra>
// kernel: grad_cam_mod_forward.1
= control target key start
LH: loop header
LB: loop body
LE: loop exit
PB: predicated region body
PF: predicated region fallthrough
CT: control target
= control target key end

     0   :  { %10 = vsyncpa [#allocation4], 0  ;;  %s1402_s0 = inlined_call_operand.vmem [shape: bf16[2,256,36], index: 0, kind: input, shape index: {}]   ;;  %s1403_s1 = inlined_call_operand.vmem [shape: bf16[36,128], index: 1, kind: input, shape index: {}]   ;;  %s1404_s2 = inlined_call_operand.vmem [shape: f32[1,128], index: 2, kind: input, shape index: {}]   ;;  %s1405_s3 = inlined_call_operand.vmem [shape: f32[128,128], index: 3, kind: input, shape index: {}]   ;;  %s1406_s4 = inlined_call_operand.vmem [shape: f32[1,128], index: 4, kind: input, shape index: {}]   ;;  %s1407_s5 = inlined_call_operand.hbm [shape: f32[2,1,128], index: 5, kind: output, shape index: {}]  }
   0x1   :  { %12 = vsyncpa [#allocation4 + $0x1], 0  ;;  %s1176_s18 = smov 0   ;;  %s1178_s19 = smov 0  }
   0x2   :  { %s1180_s20 = smov 0   ;;  %s1182_s21 = smov 0  }
   0x3   :  { %s1184_s22 = smov 0   ;;  %s1186_s23 = smov 0  }
   0x4   :  { %s1188_s24 = smov 0   ;;  %s1190_s25 = smov 0  }
   0x5 LB: > { %s732_s26 = sadd.s32 4294967295, %s1135_s25   ;;  %s733_s27 = sadd.s32 4294967294, %s1135_s25   ;;  %s1135_s25 = sphi %s1190_s25, %s18_s25   ;;  %s1131_s24 = sphi %s1188_s24, %s1416_s24   ;;  %s1127_s23 = sphi %s1186_s23, %s1415_s23   ;;  %s1123_s22 = sphi %s1184_s22, %s1414_s22   ;;  %s1119_s21 = sphi %s1182_s21, %s1413_s21   ;;  %s1115_s20 = sphi %s1180_s20, %s1412_s20   ;;  %s1111_s19 = sphi %s1178_s19, %s1411_s19   ;;  %s1107_s18 = sphi %s1176_s18, %s1410_s18  }
   0x6   : > { %s27_s28 = sadd.s32 1, %s1127_s23  ;;  %s30_s29 = sadd.s32 1, %s1131_s24 }
   0x7   : > { %p28_p0 = scmp.ge.s32.totalorder %s27_s28, 2  ;;  %p159_p1 = scmp.ne.s32.totalorder %s1115_s20, %s1111_s19 }
   0x8   : > { %p160_p2 = scmp.eq.s32.totalorder %s732_s26, 3  ;;  %p165_p4 = scmp.ne.s32.totalorder %s1111_s19, %s1107_s18 }
   0x9   : > { %s1418_s28 = smov (%p28_p0, %s27_s28), 0  ;;  %s1420_s29 = smov (!%p28_p0, %s30_s29), %s1131_s24 }
   0xa   : > { %p1225_p3 = por %p160_p2, %p159_p1  ;;  %p32_p5 = scmp.ge.s32.totalorder %s1420_s29, 2 }
   0xb   : > { %p166_p6 = scmp.eq.s32.totalorder %s733_s27, 3  ;;  %p736_p7 = scmp.ge.s32.totalorder %s1135_s25, 1 }
   0xc   : > { %p209_p8 = scmp.lt.s32.totalorder %s1135_s25, 5  ;;  %s1422_s29 = smov (%p32_p5, %s1420_s29), 0 }
   0xd   : > { %p1235_p9 = por %p166_p6, %p165_p4  ;;  %s146_s7 = ssub.s32 %s1131_s24, %s1422_s29 }
   0xe   : > { %p210_p10 = pnand %p736_p7, %p209_p8  ;;  %s149_s8 = sadd.s32 1, %s1115_s20 }
   0xf   : > { %p147_p11 = scmp.eq.s32.totalorder %s146_s7, 0  ;;  %s238_s10 = sand.u32 (!%p210_p10), 1, %s1111_s19  }
  0x10   : > { %213 = sbr.rel (%p210_p10) target bundleno = 757 (0x2f5), region = 40  ;;  %s737_s11 = sshll.u32 (!%p210_p10), %s1119_s21, 4 }
  0x11   : > { %s1243_s9 = scalar_select %p147_p11, %s1115_s20, %s149_s8  }
  0x12   : > { %p241_p12 = scmp.lt.s32.totalorder (!%p210_p10), %s1123_s22, 1  ;;  %p243_p13 = scmp.lt.s32.totalorder (!%p210_p10), %s737_s11, 31 }
  0x13   : > { %s1256_s27 = scalar_lea.vmem (!%p210_p10), [#allocation3], %s238_s10  ;;  %p740_p0 = scmp.ne.s32.totalorder (!%p210_p10), %s1119_s21, 0 }
  0x17   : > { %s242_s12 = scalar_select %p241_p12, %s1123_s22, 1 }
  0x18   : > { %s1424_s11 = smov (!%p243_p13, %s737_s11), 31  ;;  %254 = sbr.rel (%p740_p0) target bundleno = 31 (0x1f), region = 44 }
  0x19   : > { %s738_s13 = sshll.u32 %s242_s12, 5  ;;  %v1137_v0 = vmov (!%p740_p0), 0.0  }
  0x1a   : > { %s246_s14 = sadd.s32 %s738_s13, %s1424_s11  ;;  %255 = vst [vmem:[#allocation2] sm:$0x1] (!%p740_p0), %v1137_v0 }
  0x1b   : > { %s739_s15 = sshll.u32 %s246_s14, 2 }
  0x1c   : > { %s1252_s26 = scalar_lea.vmem %s1402_s0, %s739_s15 }
  0x1f PF: > { %v1030_v1 = vld [vmem:[%s1403_s1] sm:$0xff]   ;;  %v1031_v2 = vld [vmem:[%s1403_s1 + $0x8] sm:$0xff]   ;;  %vm339_vm0 = vcmask 293888   ;;  %v1032_v3 = vld [vmem:[%s1403_s1 + $0x10] ss:$0 sps:$4 sm:$0x33]  }
  0x20   : > { %810 = vmatprep.subr.bf16.mxu0 %v1030_v1  ;;  %v1033_v4 = vld [vmem:[%s1252_s26] sm:$0xff]   ;;  %vm364_vm1 = vcmask 1041408   ;;  %v1034_v6 = vld [vmem:[%s1252_s26 + $0x8] sm:$0xff]   ;;  %v1035_v7 = vld [vmem:[%s1252_s26 + $0x10] sm:$0xff]   ;;  %v1138_v13 = vmov 0.0|0.0   ;;  %vm1139_vm2 = vmmov 0  }
  0x21   : > { %811 = vmatpush3.bf16.msra.mxu0 %v1030_v1  ;;  %816 = vmatprep.mubr.msk.bf16.mxu0 %vm339_vm0, %v1033_v4  ;;  %v366_v5 = vsel %vm364_vm1, %v1032_v3, 0  ;;  %v1036_v8 = vld [vmem:[%s1252_s26 + $0x18] sm:$0xff]   ;;  %v1037_v9 = vld [vmem:[%s1252_s26 + $0x20] sm:$0xff]   ;;  %v1038_v10 = vld [vmem:[%s1252_s26 + $0x28] sm:$0xff]   ;;  %v1140_v14 = vmov 0.0   ;;  %p761_p1 = scmp.ne.s32.totalorder %s1119_s21, 1 }
  0x22   : > { %812 = vmatprep.subr.bf16.mxu0 %v1031_v2  ;;  %v1039_v11 = vld [vmem:[%s1252_s26 + $0x30] sm:$0xff]   ;;  %v1040_v12 = vld [vmem:[%s1252_s26 + $0x38] sm:$0xff]   ;;  %902 = vmatprep.subr.bf16.mxu1 %v1138_v13  ;;  %v741_v15 = vld [vmem:[%s1404_s2] ss:$0 sm:$0xff]  ;;  %vm1143_vm3 = vmmov (!%p761_p1), 0  }
  0x23   : > { %864 = vmatprep.mubr.msk.f32.mxu1 %vm1139_vm2, %v1140_v14  ;;  %v559_v14 = vld [vmem:[%s1405_s3] sm:$0xff] (!%p761_p1) }
  0x25   : > { %813 = vmatpush3.bf16.msra.mxu0 %v1031_v2 }
  0x26   : > { %950 = vmatprep.subr.msk.bf16.mxu0 %vm364_vm1, %v1032_v3 }
  0x29   : > { %815 = vmatpush3.bf16.msra.mxu0 %v366_v5 }
  0x2c   : > { %817 = vmatmul.mubr.msk.bf16.vlgmr.msra.gmra.mrb[0].mxu0 %vm339_vm0, %v1034_v6 }
  0x2d   : > { %820 = vmatprep.mubr.msk.bf16.mxu0 %vm339_vm0, %v1035_v7 }
  0x34   : > { %821 = vmatmul.mubr.msk.bf16.gmra.mrb[4].mxu0 %vm339_vm0, %v1036_v8  ;;  %v1141_v8 = vmov 1.0  }
  0x35   : > { %824 = vmatprep.mubr.msk.bf16.mxu0 %vm339_vm0, %v1037_v9  ;;  %v481_v9 = vld [vmem:[#allocation2] sm:$0x1] }
  0x3c   : > { %825 = vmatmul.mubr.msk.bf16.gmra.mrb[8].mxu0 %vm339_vm0, %v1038_v10 }
  0x3d   : > { %828 = vmatprep.mubr.msk.bf16.mxu0 %vm339_vm0, %v1039_v11 }
  0x44   : > { %829 = vmatmul.mubr.msk.bf16.gmra.mrb[12].mxu0 %vm339_vm0, %v1040_v12 }
  0xff   : > { %v818_v16 = vpop.f32.mrb[0].mxu0 }
 0x100   : > { %v411_v17 = vadd.f32 %v818_v16, %v741_v15  ;;  %v402_v18 = vpop.f32.mrb[1].mxu0  ;;  %v1142_v16 = vmov (!%p761_p1), 0.0|0.0  }
 0x101   : > { %v403_v19 = vadd.f32 %v741_v15, %v402_v18  ;;  %v819_v20 = vpop.f32.mrb[2].mxu0  ;;  %926 = vmatprep.subr.bf16.mxu0 (!%p761_p1), %v1142_v16  ;;  %v562_v18 = vld [vmem:[%s1405_s3 + $0x18] sm:$0xff] (!%p761_p1) }
 0x102   : > { %v414_v21 = vadd.f32 %v819_v20, %v741_v15  ;;  %v405_v22 = vpop.f32.mrb[3].mxu0  ;;  %v467_v24 = vmax.f32 %v411_v17, 0.0 }
 0x103   : > { %v406_v23 = vadd.f32 %v741_v15, %v405_v22  ;;  %v465_v26 = vmax.f32 %v403_v19, 0.0  ;;  %v1144_v19 = vmov (!%p761_p1), 0.0   ;;  %v564_v22 = vld [vmem:[%s1405_s3 + $0x28] sm:$0xff] (!%p761_p1) }
 0x104   : > { %v468_v25 = vmax.f32 %v414_v21, 0.0  ;;  %899 = vmatprep.mubr.msk.f32.mxu0 (!%p761_p1), %vm1143_vm3, %v1144_v19  ;;  %v563_v21 = vld [vmem:[%s1405_s3 + $0x20] sm:$0xff] (!%p761_p1) }
 0x105   : > { %v466_v27 = vmax.f32 %v406_v23, 0.0  ;;  %v933_v23 = vpack.c.bf16 (!%p761_p1), %v564_v22, %v563_v21 }
 0x106   : > { %v906_v28 = vpack.c.bf16 %v468_v25, %v467_v24  ;;  %v565_v24 = vld [vmem:[%s1405_s3 + $0x30] sm:$0xff] (!%p761_p1)  ;;  %v566_v25 = vld [vmem:[%s1405_s3 + $0x38] sm:$0xff] (!%p761_p1) }
 0x107   : > { %v822_v29 = vpop.f32.mrb[4].mxu0  ;;  %v903_v30 = vpack.c.bf16 %v466_v27, %v465_v26  ;;  %v936_v26 = vpack.c.bf16 (!%p761_p1), %v566_v25, %v565_v24  ;;  %v567_v27 = vld [vmem:[%s1405_s3 + $0x40] sm:$0xff] (!%p761_p1) }
 0x108   : > { %v427_v31 = vadd.f32 %v822_v29, %v741_v15  ;;  %v418_v32 = vpop.f32.mrb[5].mxu0 }
 0x109   : > { %v419_v33 = vadd.f32 %v741_v15, %v418_v32  ;;  %v823_v34 = vpop.f32.mrb[6].mxu0  ;;  %904 = vmatpush3.bf16.msra.mxu1 %v903_v30  ;;  %v569_v30 = vld [vmem:[%s1405_s3 + $0x50] sm:$0xff] (!%p761_p1) }
 0x10a   : > { %v430_v35 = vadd.f32 %v823_v34, %v741_v15  ;;  %v421_v36 = vpop.f32.mrb[7].mxu0  ;;  %905 = vmatprep.subr.bf16.mxu1 %v1138_v13  ;;  %v471_v38 = vmax.f32 %v427_v31, 0.0  ;;  %v570_v31 = vld [vmem:[%s1405_s3 + $0x58] sm:$0xff] (!%p761_p1)  ;;  %v572_v34 = vld [vmem:[%s1405_s3 + $0x68] sm:$0xff] (!%p761_p1) }
 0x10b   : > { %v422_v37 = vadd.f32 %v741_v15, %v421_v36  ;;  %v469_v40 = vmax.f32 %v419_v33, 0.0  ;;  %v942_v32 = vpack.c.bf16 (!%p761_p1), %v570_v31, %v569_v30  ;;  %v571_v33 = vld [vmem:[%s1405_s3 + $0x60] sm:$0xff] (!%p761_p1)  ;;  %v573_v36 = vld [vmem:[%s1405_s3 + $0x70] sm:$0xff] (!%p761_p1) }
 0x10c   : > { %v472_v39 = vmax.f32 %v430_v35, 0.0  ;;  %v945_v35 = vpack.c.bf16 (!%p761_p1), %v572_v34, %v571_v33 }
 0x10d   : > { %v470_v41 = vmax.f32 %v422_v37, 0.0  ;;  %907 = vmatpush3.bf16.msra.mxu1 %v906_v28  ;;  %v568_v28 = vld [vmem:[%s1405_s3 + $0x48] sm:$0xff] (!%p761_p1)  ;;  %v574_v37 = vld [vmem:[%s1405_s3 + $0x78] sm:$0xff] (!%p761_p1) }
 0x10e   : > { %v912_v42 = vpack.c.bf16 %v472_v39, %v471_v38  ;;  %908 = vmatprep.subr.bf16.mxu1 %v1138_v13  ;;  %v939_v29 = vpack.c.bf16 (!%p761_p1), %v568_v28, %v567_v27  ;;  %v948_v38 = vpack.c.bf16 (!%p761_p1), %v574_v37, %v573_v36 }
 0x10f   : > { %v909_v43 = vpack.c.bf16 %v470_v41, %v469_v40  ;;  %v826_v44 = vpop.f32.mrb[8].mxu0  ;;  %v575_v40 = vld [vmem:[%s1406_s4] sm:$0x1] (!%p761_p1) }
 0x110   : > { %v443_v45 = vadd.f32 %v826_v44, %v741_v15  ;;  %v434_v46 = vpop.f32.mrb[9].mxu0 }
 0x111   : > { %v435_v47 = vadd.f32 %v741_v15, %v434_v46  ;;  %v827_v48 = vpop.f32.mrb[10].mxu0  ;;  %910 = vmatpush3.bf16.msra.mxu1 %v909_v43 }
 0x112   : > { %v446_v49 = vadd.f32 %v827_v48, %v741_v15  ;;  %v437_v50 = vpop.f32.mrb[11].mxu0  ;;  %911 = vmatprep.subr.bf16.mxu1 %v1138_v13  ;;  %v475_v52 = vmax.f32 %v443_v45, 0.0 }
 0x113   : > { %v438_v51 = vadd.f32 %v741_v15, %v437_v50  ;;  %v473_v54 = vmax.f32 %v435_v47, 0.0 }
 0x114   : > { %v476_v53 = vmax.f32 %v446_v49, 0.0 }
 0x115   : > { %v474_v55 = vmax.f32 %v438_v51, 0.0  ;;  %913 = vmatpush3.bf16.msra.mxu1 %v912_v42 }
 0x116   : > { %v918_v56 = vpack.c.bf16 %v476_v53, %v475_v52  ;;  %914 = vmatprep.subr.bf16.mxu1 %v1138_v13 }
 0x117   : > { %v915_v57 = vpack.c.bf16 %v474_v55, %v473_v54  ;;  %v830_v58 = vpop.f32.mrb[12].mxu0 }
 0x118   : > { %v459_v59 = vadd.f32 %v830_v58, %v741_v15  ;;  %v450_v60 = vpop.f32.mrb[13].mxu0 }
 0x119   : > { %v451_v61 = vadd.f32 %v741_v15, %v450_v60  ;;  %v831_v62 = vpop.f32.mrb[14].mxu0  ;;  %916 = vmatpush3.bf16.msra.mxu1 %v915_v57 }
 0x11a   : > { %v462_v63 = vadd.f32 %v831_v62, %v741_v15  ;;  %v453_v0 = vpop.f32.mrb[15].mxu0  ;;  %917 = vmatprep.subr.bf16.mxu1 %v1138_v13  ;;  %v479_v2 = vmax.f32 %v459_v59, 0.0 }
 0x11b   : > { %v454_v1 = vadd.f32 %v741_v15, %v453_v0  ;;  %v477_v4 = vmax.f32 %v451_v61, 0.0  ;;  %v560_v15 = vld [vmem:[%s1405_s3 + $0x8] sm:$0xff] (!%p761_p1) }
 0x11c   : > { %v480_v3 = vmax.f32 %v462_v63, 0.0  ;;  %v927_v17 = vpack.c.bf16 (!%p761_p1), %v560_v15, %v559_v14 }
 0x11d   : > { %v478_v5 = vmax.f32 %v454_v1, 0.0  ;;  %919 = vmatpush3.bf16.msra.mxu1 %v918_v56 }
 0x11e   : > { %v924_v6 = vpack.c.bf16 %v480_v3, %v479_v2  ;;  %920 = vmatprep.subr.bf16.mxu1 %v1138_v13  ;;  %928 = vmatpush3.bf16.msra.mxu0 (!%p761_p1), %v927_v17 }
 0x11f   : > { %v921_v7 = vpack.c.bf16 %v478_v5, %v477_v4  ;;  %929 = vmatprep.subr.bf16.mxu0 (!%p761_p1), %v1142_v16 }
 0x121   : > { %922 = vmatpush3.bf16.msra.mxu1 %v921_v7 }
 0x122   : > { %923 = vmatprep.subr.bf16.mxu1 %v1138_v13  ;;  %v561_v13 = vld [vmem:[%s1405_s3 + $0x10] sm:$0xff] (!%p761_p1) }
 0x123   : > { %v930_v20 = vpack.c.bf16 (!%p761_p1), %v562_v18, %v561_v13 }
 0x125   : > { %925 = vmatpush3.bf16.msra.mxu1 %v924_v6  ;;  %931 = vmatpush3.bf16.msra.mxu0 (!%p761_p1), %v930_v20 }
 0x126   : > { %932 = vmatprep.subr.bf16.mxu0 (!%p761_p1), %v1142_v16 }
 0x128   : > { %865 = vmatmul.mubr.f32.vlgmr.msra.gmra.mrb[0].mxu1 %v1141_v8 }
 0x129   : > { %934 = vmatpush3.bf16.msra.mxu0 (!%p761_p1), %v933_v23 }
 0x12a   : > { %935 = vmatprep.subr.bf16.mxu0 (!%p761_p1), %v1142_v16 }
 0x12d   : > { %937 = vmatpush3.bf16.msra.mxu0 (!%p761_p1), %v936_v26 }
 0x12e   : > { %938 = vmatprep.subr.bf16.mxu0 (!%p761_p1), %v1142_v16 }
 0x131   : > { %940 = vmatpush3.bf16.msra.mxu0 (!%p761_p1), %v939_v29 }
 0x132   : > { %941 = vmatprep.subr.bf16.mxu0 (!%p761_p1), %v1142_v16 }
 0x135   : > { %943 = vmatpush3.bf16.msra.mxu0 (!%p761_p1), %v942_v32 }
 0x136   : > { %944 = vmatprep.subr.bf16.mxu0 (!%p761_p1), %v1142_v16 }
 0x139   : > { %946 = vmatpush3.bf16.msra.mxu0 (!%p761_p1), %v945_v35 }
 0x13a   : > { %947 = vmatprep.subr.bf16.mxu0 (!%p761_p1), %v1142_v16 }
 0x13d   : > { %949 = vmatpush3.bf16.msra.mxu0 (!%p761_p1), %v948_v38 }
 0x1f8   : > { %557 = sbr.rel (%p761_p1) target bundleno = 733 (0x2dd), region = 48 }
 0x1fb   : > { %v548_v10 = vpop.f32.mrb[0].mxu1 }
 0x1fc   : > { %v552_v11 = vadd.f32 %v548_v10, %v481_v9  ;;  %v866_v12 = vpop.f32.mrb[1].mxu1 }
 0x1fe   : > { %553 = vst [vmem:[#allocation2] sm:$0x1] %v552_v11 }
 0x205   : > { %v558_v39 = vld [vmem:[#allocation2] sm:$0x1] }
 0x206   : > { %900 = vmatmul.mubr.f32.vlgmr.msra.gmra.mrb[0].mxu0 %v558_v39 }
 0x2d9   : > { %v642_v41 = vpop.f32.mrb[0].mxu0 }
 0x2da   : > { %v643_v42 = vadd.f32 %v642_v41, %v575_v40  ;;  %v901_v43 = vpop.f32.mrb[1].mxu0 }
 0x2dc   : > { %646 = vst [vmem:[%s1256_s27] sm:$0x1] %v643_v42 }
 0x2dd PF: > { %s762_s26 = sshll.u32 %s1123_s22, 4  ;;  %s660_s12 = sshll.u32 %s1256_s27, 4  ;;  %s661_s12 = int_to_ptr.vmem [resolvable:$true] %s660_s12 }
 0x2de   : > { %s1352_s11 = scalar_lea.hbm %s1407_s5, %s762_s26  ;;  %s648_s13 = scalar_lea.sflag [#allocation4], %s238_s10 }
 0x2df   : > { %s1041_s14 = scalar_lea.vmem %s661_s12, 16  ;;  %s1145_s21 = smov [#allocation3]  }
 0x2e0   : > { %p1042_p2 = scmp.ne.s32.totalorder %s661_s12, %s1041_s14  ;;  %s1045_s15 = sshll.u32 %s1145_s21, 4  ;;  %s1046_s15 = int_to_ptr.vmem [resolvable:$false] %s1045_s15 }
 0x2e1   : > { %s1047_s16 = scalar_lea.vmem %s1046_s15, 32  ;;  %p1048_p6 = scmp.lt.s32.totalorder %s661_s12, %s1046_s15 }
 0x2e2   : > { %p1043_p4 = pnand %p1042_p2, %p1225_p3  ;;  %p1049_p7 = scmp.lt.s32.totalorder %s1047_s16, %s1041_s14 }
 0x2e4   : > { %p1044_p5 = pneg %p1043_p4  ;;  %p1050_p8 = por %p1049_p7, %p1048_p6 }
 0x2e6   : > { %p1051_p10 = pnand %p1050_p8, %p1044_p5 }
 0x2e8   : > { %1054 = shalt.err (!%p1051_p10)
}
 0x2e9   : > { %s1055_s22 = scalar_lea.hbm %s1352_s11, 16  ;;  %s1059_s17 = scalar_lea.hbm %s1407_s5, 32 }
 0x2ea   : > { %p1056_p11 = scmp.ne.s32.totalorder %s1352_s11, %s1055_s22  ;;  %p1060_p0 = scmp.lt.u32.totalorder %s1352_s11, %s1407_s5 }
 0x2eb   : > { %p1061_p1 = scmp.lt.u32.totalorder %s1059_s17, %s1055_s22  ;;  %p1063_p4 = scmp.lt.u32.totalorder %s1055_s22, %s1352_s11 }
 0x2ec   : > { %p1057_p12 = pnand %p1056_p11, %p1225_p3 }
 0x2ed   : > { %p1062_p2 = por %p1061_p1, %p1060_p0 }
 0x2ee   : > { %p1058_p13 = pneg %p1057_p12 }
 0x2ef   : > { %p1064_p5 = por %p1063_p4, %p1062_p2 }
 0x2f1   : > { %p1065_p6 = pnand %p1064_p5, %p1058_p13 }
 0x2f3   : > { %1068 = shalt.err (!%p1065_p6)
}
 0x2f4   : > { %951 = dma.vmem_to_hbm [thread:$0]  (%p1225_p3), %s661_s12, 16, %s1352_s11, %s648_s13  }
 0x2f5 PF: > { %p957_p7 = scmp.ge.s32.totalorder %s1135_s25, 2  ;;  %s672_s8 = sand.u32 1, %s1107_s18  }
 0x2f6   : > { %s673_s14 = scalar_lea.sflag [#allocation4], %s672_s8 }
 0x2f7   : > { %p954_p8 = pnand %p957_p7, %p1235_p9 }
 0x2f9   : > { %1102 = dma.done.wait (!%p954_p8), %s673_s14, 16  }
 0x2fa   : > { %1104 = vsyncadd (!%p954_p8), %s673_s14, 4294967280  ;;  %s18_s25 = sadd.s32 1, %s1135_s25   ;;  %s1410_s18 = smov %s1111_s19 }
 0x2fb   : > { %p15_p10 = scmp.ge.s32.totalorder %s18_s25, 6   ;;  %s1411_s19 = smov %s1115_s20 }
 0x2fc   : > { %s1412_s20 = smov %s1243_s9  ;;  %s1413_s21 = smov %s1127_s23 }
 0x2fd   : > { %s1414_s22 = smov %s1131_s24  ;;  %s1415_s23 = smov %s1418_s28 }
 0x2fe   : > { %s1416_s24 = smov %s1422_s29  ;;  %17 = sbr.rel (!%p15_p10) target bundleno = 5 (0x5), region = 83 }
 0x305   :  { %677 = vsyncpa [#allocation4], 1 }
 0x306   :  { %679 = vsyncpa [#allocation4 + $0x1], 1 }

</bundles_post_ra>
